<compile_context>
chip_gen: v6e
topology: v6e:2x2x1
jax: 0.10.0
libtpu: 0.0.40
codegen_flags: <defaults>
</compile_context>

<pallas_src>
import functools
import math

import jax
import jax.numpy as jnp
from jax.experimental import pallas as pl
from jax.experimental.pallas import tpu as pltpu

_UNROLL = 8  # block_tokens is always a multiple of 8


def _round_up(n: int, m: int) -> int:
    return ((n + m - 1) // m) * m


def _embed_vmem_kernel(ids_ref, emb_ref, out_ref, *, block_tokens, scale):
    # ids_ref : (1, block_tokens) int32, SMEM block
    # emb_ref : (V, D) embedding table, resident in VMEM across the whole grid
    # out_ref : (block_tokens, D) VMEM output block
    @pl.loop(0, block_tokens // _UNROLL)
    def _(g):
        base = pl.multiple_of(g * _UNROLL, _UNROLL)
        for u in range(_UNROLL):          # static unroll: interleave id load + row read
            t = base + u
            tok = ids_ref[0, t]
            row = emb_ref[tok, :].astype(jnp.float32) * scale
            out_ref[t, :] = row.astype(out_ref.dtype)


def _embed_hbm_gather_kernel(ids_ref, emb_hbm, out_ref, sem, *, block_tokens, scale):
    # ids_ref : (1, block_tokens) int32, SMEM block
    # emb_hbm : (V, D) embedding table, left in HBM (memory_space=pl.ANY)
    # out_ref : (block_tokens, D) VMEM output block
    # sem     : single shared DMA semaphore (all row copies signal it)

    # Issue one row DMA per token: HBM table row -> output row.
    @pl.loop(0, block_tokens // _UNROLL)
    def _(g):
        base = pl.multiple_of(g * _UNROLL, _UNROLL)
        for u in range(_UNROLL):          # static unroll of the issue loop
            t = base + u
            tok = ids_ref[0, t]
            pltpu.make_async_copy(
                emb_hbm.at[pl.ds(tok, 1), :],
                out_ref.at[pl.ds(t, 1), :],
                sem,
            ).start()

    # ONE aggregate wait: the descriptor only supplies the byte count / target ref
    # (block_tokens * D * itemsize == total bytes signaled by all row copies above).
    pltpu.make_async_copy(out_ref, out_ref, sem).wait()

    # Apply the sqrt(d_model) scale in place.
    out_ref[...] = (out_ref[...].astype(jnp.float32) * scale).astype(out_ref.dtype)


def input_embeddings(x, embedding, *, block_tokens=None,
                     table_vmem_cutoff_bytes=16 * 1024 * 1024):
    """x: (B, S) integer token ids; embedding: (vocab_size, d_model) table."""
    B, S = x.shape
    V, D = embedding.shape
    N = B * S
    itemsize = jnp.dtype(embedding.dtype).itemsize
    scale = float(math.sqrt(D))

    # --- block size selection (always a multiple of 8) ------------------------------
    if block_tokens is None:
        block_tokens = 256
        # Cap so double-buffered output blocks stay ~<= 8 MiB (v7x: only 64 MiB VMEM).
        cap = (8 * 1024 * 1024) // max(1, 2 * D * itemsize)
        cap = max(8, (cap // 8) * 8)
        block_tokens = min(block_tokens, cap)
    else:
        block_tokens = max(8, _round_up(int(block_tokens), 8))
    block_tokens = min(block_tokens, _round_up(N, 8))

    n_pad = _round_up(N, block_tokens)
    n_blocks = n_pad // block_tokens

    # --- ids: flattened, padded (padded slots gather row 0, sliced away below),
    #     reshaped to (n_blocks, block_tokens) and fed as a blocked SMEM input. -------
    ids = x.reshape(-1).astype(jnp.int32)
    if n_pad != N:
        ids = jnp.pad(ids, (0, n_pad - N))
    ids2d = ids.reshape(n_blocks, block_tokens)

    table_bytes = V * D * itemsize
    resident = table_bytes <= table_vmem_cutoff_bytes
    out_block_bytes = block_tokens * D * itemsize

    ids_spec = pl.BlockSpec((1, block_tokens), lambda i: (i, 0),
                            memory_space=pltpu.MemorySpace.SMEM)
    out_spec = pl.BlockSpec((block_tokens, D), lambda i: (i, 0))

    if resident:
        kernel = functools.partial(_embed_vmem_kernel,
                                   block_tokens=block_tokens, scale=scale)
        in_specs = [ids_spec, pl.BlockSpec((V, D), lambda i: (0, 0))]  # table resident
        scratch = []
        hbm_read_bytes = table_bytes                # table loaded once
    else:
        kernel = functools.partial(_embed_hbm_gather_kernel,
                                   block_tokens=block_tokens, scale=scale)
        in_specs = [ids_spec, pl.BlockSpec(memory_space=pl.ANY)]        # table in HBM
        scratch = [pltpu.SemaphoreType.DMA(())]     # single shared DMA semaphore
        hbm_read_bytes = N * D * itemsize           # one row per token

    vmem_limit = 2 * out_block_bytes + (table_bytes if resident else 0) + (4 << 20)
    vmem_limit = int(min(max(vmem_limit, 16 << 20), 48 << 20))

    cost = pl.CostEstimate(
        flops=int(N * D),                           # the sqrt(d_model) scale
        transcendentals=0,
        bytes_accessed=int(N * D * itemsize + hbm_read_bytes + N * 4),
    )

    out = pl.pallas_call(
        kernel,
        out_shape=jax.ShapeDtypeStruct((n_pad, D), embedding.dtype),
        grid_spec=pltpu.PrefetchScalarGridSpec(
            num_scalar_prefetch=0,
            grid=(n_blocks,),
            in_specs=in_specs,
            out_specs=out_spec,
            scratch_shapes=scratch,
        ),
        compiler_params=pltpu.CompilerParams(
            dimension_semantics=("parallel",),      # token blocks independent (v7x 2-TC)
            vmem_limit_bytes=vmem_limit,
        ),
        cost_estimate=cost,
    )(ids2d, embedding)

    return out[:N].reshape(B, S, D)


if __name__ == "__main__":
    key = jax.random.PRNGKey(0)
    k_emb, k_ids, k_emb2, k_ids2 = jax.random.split(key, 4)

    # --- test 1: module-sized shapes (d_model=32, vocab=64) -> resident-table path ---
    d_model, vocab_size = 32, 64
    B, S = 2, 8
    embedding = jax.random.normal(k_emb, (vocab_size, d_model), dtype=jnp.float32)
    x = jax.random.randint(k_ids, (B, S), 0, vocab_size, dtype=jnp.int32)

    out = jax.block_until_ready(input_embeddings(x, embedding))
    ref = jnp.take(embedding, x, axis=0) * math.sqrt(d_model)
    assert out.shape == (B, S, d_model)
    assert jnp.allclose(out, ref, atol=1e-5, rtol=1e-5)

    # --- test 2: force the HBM row-gather path (multiple grid steps + padding) -------
    d2, v2 = 128, 512
    B2, S2 = 2, 40                                   # 80 tokens, block=32 -> 3 steps
    emb2 = jax.random.normal(k_emb2, (v2, d2), dtype=jnp.float32)
    x2 = jax.random.randint(k_ids2, (B2, S2), 0, v2, dtype=jnp.int32)

    out2 = jax.block_until_ready(
        input_embeddings(x2, emb2, block_tokens=32, table_vmem_cutoff_bytes=0))
    ref2 = jnp.take(emb2, x2, axis=0) * math.sqrt(d2)
    assert out2.shape == (B2, S2, d2)
    assert jnp.allclose(out2, ref2, atol=1e-5, rtol=1e-5)

    print("KERNEL_OK")
</pallas_src>

<mosaic_0001>
module attributes {stable_mosaic.version = 11 : i64} {
  func.func @_embed_vmem_kernel(%arg0: i32, %arg1: memref<1x16xi32, #tpu.memory_space<smem>>, %arg2: memref<64x32xf32, #tpu.memory_space<vmem>>, %arg3: memref<16x32xf32, #tpu.memory_space<vmem>>) attributes {dimension_semantics = [#tpu.dimension_semantics<parallel>], iteration_bounds = array<i64: 1>, scalar_prefetch = 0 : i64, scratch_operands = 0 : i64, tpu.core_type = #tpu.core_type<tc>, window_params = [{transform_indices = @transform_0, window_bounds = array<i64: 1, 16>}, {pipeline_mode = #tpu.pipeline_mode<synchronous>, transform_indices = @transform_1, window_bounds = array<i64: 64, 32>}, {transform_indices = @transform_2, window_bounds = array<i64: 16, 32>}]} {
    %c0_i32 = arith.constant 0 : i32
    %c2_i32 = arith.constant 2 : i32
    %0 = arith.addi %c0_i32, %c2_i32 : i32
    %c1_i32 = arith.constant 1 : i32
    scf.for %arg4 = %c0_i32 to %0 step %c1_i32  : i32 {
      %c1_i32_1 = arith.constant 1 : i32
      %1 = arith.muli %arg4, %c1_i32_1 : i32
      %c0_i32_2 = arith.constant 0 : i32
      %2 = arith.addi %c0_i32_2, %1 : i32
      %c8_i32 = arith.constant 8 : i32
      %3 = arith.muli %2, %c8_i32 : i32
      %4 = tpu.assume_multiple %3, 8 : i32
      %c0_i32_3 = arith.constant 0 : i32
      %5 = arith.addi %4, %c0_i32_3 : i32
      %c0 = arith.constant 0 : index
      %6 = arith.index_cast %5 : i32 to index
      %7 = memref.load %arg1[%c0, %6] : memref<1x16xi32, #tpu.memory_space<smem>>
      %8 = arith.index_cast %7 : i32 to index
      %c0_4 = arith.constant 0 : index
      %9 = vector.load %arg2[%8, %c0_4] : memref<64x32xf32, #tpu.memory_space<vmem>>, vector<1x32xf32>
      %10 = vector.shape_cast %9 : vector<1x32xf32> to vector<32xf32>
      %cst = arith.constant 5.65685415 : f32
      %11 = vector.broadcast %cst : f32 to vector<32xf32>
      %12 = arith.mulf %10, %11 : vector<32xf32>
      %13 = arith.index_cast %5 : i32 to index
      %c0_5 = arith.constant 0 : index
      %14 = vector.load %arg3[%13, %c0_5] : memref<16x32xf32, #tpu.memory_space<vmem>>, vector<1x32xf32>
      %15 = vector.shape_cast %14 : vector<1x32xf32> to vector<32xf32>
      %16 = vector.shape_cast %12 : vector<32xf32> to vector<1x32xf32>
      tpu.vector_store %arg3[%13, %c0_5], %16 {strides = array<i32>} : memref<16x32xf32, #tpu.memory_space<vmem>>, vector<1x32xf32>,
      %c1_i32_6 = arith.constant 1 : i32
      %17 = arith.addi %4, %c1_i32_6 : i32
      %c0_7 = arith.constant 0 : index
      %18 = arith.index_cast %17 : i32 to index
      %19 = memref.load %arg1[%c0_7, %18] : memref<1x16xi32, #tpu.memory_space<smem>>
      %20 = arith.index_cast %19 : i32 to index
      %c0_8 = arith.constant 0 : index
      %21 = vector.load %arg2[%20, %c0_8] : memref<64x32xf32, #tpu.memory_space<vmem>>, vector<1x32xf32>
      %22 = vector.shape_cast %21 : vector<1x32xf32> to vector<32xf32>
      %cst_9 = arith.constant 5.65685415 : f32
      %23 = vector.broadcast %cst_9 : f32 to vector<32xf32>
      %24 = arith.mulf %22, %23 : vector<32xf32>
      %25 = arith.index_cast %17 : i32 to index
      %c0_10 = arith.constant 0 : index
      %26 = vector.load %arg3[%25, %c0_10] : memref<16x32xf32, #tpu.memory_space<vmem>>, vector<1x32xf32>
      %27 = vector.shape_cast %26 : vector<1x32xf32> to vector<32xf32>
      %28 = vector.shape_cast %24 : vector<32xf32> to vector<1x32xf32>
      tpu.vector_store %arg3[%25, %c0_10], %28 {strides = array<i32>} : memref<16x32xf32, #tpu.memory_space<vmem>>, vector<1x32xf32>,
      %c2_i32_11 = arith.constant 2 : i32
      %29 = arith.addi %4, %c2_i32_11 : i32
      %c0_12 = arith.constant 0 : index
      %30 = arith.index_cast %29 : i32 to index
      %31 = memref.load %arg1[%c0_12, %30] : memref<1x16xi32, #tpu.memory_space<smem>>
      %32 = arith.index_cast %31 : i32 to index
      %c0_13 = arith.constant 0 : index
      %33 = vector.load %arg2[%32, %c0_13] : memref<64x32xf32, #tpu.memory_space<vmem>>, vector<1x32xf32>
      %34 = vector.shape_cast %33 : vector<1x32xf32> to vector<32xf32>
      %cst_14 = arith.constant 5.65685415 : f32
      %35 = vector.broadcast %cst_14 : f32 to vector<32xf32>
      %36 = arith.mulf %34, %35 : vector<32xf32>
      %37 = arith.index_cast %29 : i32 to index
      %c0_15 = arith.constant 0 : index
      %38 = vector.load %arg3[%37, %c0_15] : memref<16x32xf32, #tpu.memory_space<vmem>>, vector<1x32xf32>
      %39 = vector.shape_cast %38 : vector<1x32xf32> to vector<32xf32>
      %40 = vector.shape_cast %36 : vector<32xf32> to vector<1x32xf32>
      tpu.vector_store %arg3[%37, %c0_15], %40 {strides = array<i32>} : memref<16x32xf32, #tpu.memory_space<vmem>>, vector<1x32xf32>,
      %c3_i32 = arith.constant 3 : i32
      %41 = arith.addi %4, %c3_i32 : i32
      %c0_16 = arith.constant 0 : index
      %42 = arith.index_cast %41 : i32 to index
      %43 = memref.load %arg1[%c0_16, %42] : memref<1x16xi32, #tpu.memory_space<smem>>
      %44 = arith.index_cast %43 : i32 to index
      %c0_17 = arith.constant 0 : index
      %45 = vector.load %arg2[%44, %c0_17] : memref<64x32xf32, #tpu.memory_space<vmem>>, vector<1x32xf32>
      %46 = vector.shape_cast %45 : vector<1x32xf32> to vector<32xf32>
      %cst_18 = arith.constant 5.65685415 : f32
      %47 = vector.broadcast %cst_18 : f32 to vector<32xf32>
      %48 = arith.mulf %46, %47 : vector<32xf32>
      %49 = arith.index_cast %41 : i32 to index
      %c0_19 = arith.constant 0 : index
      %50 = vector.load %arg3[%49, %c0_19] : memref<16x32xf32, #tpu.memory_space<vmem>>, vector<1x32xf32>
      %51 = vector.shape_cast %50 : vector<1x32xf32> to vector<32xf32>
      %52 = vector.shape_cast %48 : vector<32xf32> to vector<1x32xf32>
      tpu.vector_store %arg3[%49, %c0_19], %52 {strides = array<i32>} : memref<16x32xf32, #tpu.memory_space<vmem>>, vector<1x32xf32>,
      %c4_i32 = arith.constant 4 : i32
      %53 = arith.addi %4, %c4_i32 : i32
      %c0_20 = arith.constant 0 : index
      %54 = arith.index_cast %53 : i32 to index
      %55 = memref.load %arg1[%c0_20, %54] : memref<1x16xi32, #tpu.memory_space<smem>>
      %56 = arith.index_cast %55 : i32 to index
      %c0_21 = arith.constant 0 : index
      %57 = vector.load %arg2[%56, %c0_21] : memref<64x32xf32, #tpu.memory_space<vmem>>, vector<1x32xf32>
      %58 = vector.shape_cast %57 : vector<1x32xf32> to vector<32xf32>
      %cst_22 = arith.constant 5.65685415 : f32
      %59 = vector.broadcast %cst_22 : f32 to vector<32xf32>
      %60 = arith.mulf %58, %59 : vector<32xf32>
      %61 = arith.index_cast %53 : i32 to index
      %c0_23 = arith.constant 0 : index
      %62 = vector.load %arg3[%61, %c0_23] : memref<16x32xf32, #tpu.memory_space<vmem>>, vector<1x32xf32>
      %63 = vector.shape_cast %62 : vector<1x32xf32> to vector<32xf32>
      %64 = vector.shape_cast %60 : vector<32xf32> to vector<1x32xf32>
      tpu.vector_store %arg3[%61, %c0_23], %64 {strides = array<i32>} : memref<16x32xf32, #tpu.memory_space<vmem>>, vector<1x32xf32>,
      %c5_i32 = arith.constant 5 : i32
      %65 = arith.addi %4, %c5_i32 : i32
      %c0_24 = arith.constant 0 : index
      %66 = arith.index_cast %65 : i32 to index
      %67 = memref.load %arg1[%c0_24, %66] : memref<1x16xi32, #tpu.memory_space<smem>>
      %68 = arith.index_cast %67 : i32 to index
      %c0_25 = arith.constant 0 : index
      %69 = vector.load %arg2[%68, %c0_25] : memref<64x32xf32, #tpu.memory_space<vmem>>, vector<1x32xf32>
      %70 = vector.shape_cast %69 : vector<1x32xf32> to vector<32xf32>
      %cst_26 = arith.constant 5.65685415 : f32
      %71 = vector.broadcast %cst_26 : f32 to vector<32xf32>
      %72 = arith.mulf %70, %71 : vector<32xf32>
      %73 = arith.index_cast %65 : i32 to index
      %c0_27 = arith.constant 0 : index
      %74 = vector.load %arg3[%73, %c0_27] : memref<16x32xf32, #tpu.memory_space<vmem>>, vector<1x32xf32>
      %75 = vector.shape_cast %74 : vector<1x32xf32> to vector<32xf32>
      %76 = vector.shape_cast %72 : vector<32xf32> to vector<1x32xf32>
      tpu.vector_store %arg3[%73, %c0_27], %76 {strides = array<i32>} : memref<16x32xf32, #tpu.memory_space<vmem>>, vector<1x32xf32>,
      %c6_i32 = arith.constant 6 : i32
      %77 = arith.addi %4, %c6_i32 : i32
      %c0_28 = arith.constant 0 : index
      %78 = arith.index_cast %77 : i32 to index
      %79 = memref.load %arg1[%c0_28, %78] : memref<1x16xi32, #tpu.memory_space<smem>>
      %80 = arith.index_cast %79 : i32 to index
      %c0_29 = arith.constant 0 : index
      %81 = vector.load %arg2[%80, %c0_29] : memref<64x32xf32, #tpu.memory_space<vmem>>, vector<1x32xf32>
      %82 = vector.shape_cast %81 : vector<1x32xf32> to vector<32xf32>
      %cst_30 = arith.constant 5.65685415 : f32
      %83 = vector.broadcast %cst_30 : f32 to vector<32xf32>
      %84 = arith.mulf %82, %83 : vector<32xf32>
      %85 = arith.index_cast %77 : i32 to index
      %c0_31 = arith.constant 0 : index
      %86 = vector.load %arg3[%85, %c0_31] : memref<16x32xf32, #tpu.memory_space<vmem>>, vector<1x32xf32>
      %87 = vector.shape_cast %86 : vector<1x32xf32> to vector<32xf32>
      %88 = vector.shape_cast %84 : vector<32xf32> to vector<1x32xf32>
      tpu.vector_store %arg3[%85, %c0_31], %88 {strides = array<i32>} : memref<16x32xf32, #tpu.memory_space<vmem>>, vector<1x32xf32>,
      %c7_i32 = arith.constant 7 : i32
      %89 = arith.addi %4, %c7_i32 : i32
      %c0_32 = arith.constant 0 : index
      %90 = arith.index_cast %89 : i32 to index
      %91 = memref.load %arg1[%c0_32, %90] : memref<1x16xi32, #tpu.memory_space<smem>>
      %92 = arith.index_cast %91 : i32 to index
      %c0_33 = arith.constant 0 : index
      %93 = vector.load %arg2[%92, %c0_33] : memref<64x32xf32, #tpu.memory_space<vmem>>, vector<1x32xf32>
      %94 = vector.shape_cast %93 : vector<1x32xf32> to vector<32xf32>
      %cst_34 = arith.constant 5.65685415 : f32
      %95 = vector.broadcast %cst_34 : f32 to vector<32xf32>
      %96 = arith.mulf %94, %95 : vector<32xf32>
      %97 = arith.index_cast %89 : i32 to index
      %c0_35 = arith.constant 0 : index
      %98 = vector.load %arg3[%97, %c0_35] : memref<16x32xf32, #tpu.memory_space<vmem>>, vector<1x32xf32>
      %99 = vector.shape_cast %98 : vector<1x32xf32> to vector<32xf32>
      %100 = vector.shape_cast %96 : vector<32xf32> to vector<1x32xf32>
      tpu.vector_store %arg3[%97, %c0_35], %100 {strides = array<i32>} : memref<16x32xf32, #tpu.memory_space<vmem>>, vector<1x32xf32>,
    }
    %c2_i32_0 = arith.constant 2 : i32
    return
  }
  func.func @transform_0(%arg0: i32) -> (i32, i32) {
    %c0_i32 = arith.constant 0 : i32
    %c0_i32_0 = arith.constant 0 : i32
    return %arg0, %c0_i32 : i32, i32
  }
  func.func @transform_1(%arg0: i32) -> (i32, i32) {
    %c0_i32 = arith.constant 0 : i32
    %c0_i32_0 = arith.constant 0 : i32
    %c0_i32_1 = arith.constant 0 : i32
    return %c0_i32, %c0_i32_0 : i32, i32
  }
  func.func @transform_2(%arg0: i32) -> (i32, i32) {
    %c0_i32 = arith.constant 0 : i32
    %c0_i32_0 = arith.constant 0 : i32
    return %arg0, %c0_i32 : i32, i32
  }
}

</mosaic_0001>

<bundles_post_ra>
// kernel: tpu_custom_call.1
= control target key start
LH: loop header
LB: loop body
LE: loop exit
PB: predicated region body
PF: predicated region fallthrough
CT: control target
= control target key end

     0   :  { %7 = vsyncpa [#allocation4], 0  ;;  %s278_s0 = inlined_call_operand.vmem [shape: s32[1,16], index: 0, kind: input, shape index: {}]   ;;  %s279_s1 = inlined_call_operand.vmem [shape: f32[64,32], index: 1, kind: input, shape index: {}]   ;;  %s280_s2 = inlined_call_operand.hbm [shape: f32[16,32], index: 2, kind: output, shape index: {}]  }
   0x1   :  { %8 = vsyncpa [#allocation3], 0  ;;  %s15_s11 = sshll.u32 %s278_s0, 4  ;;  %s16_s11 = int_to_ptr.vmem [resolvable:$true] %s15_s11 }
   0x2   :  { %s168_s12 = scalar_lea.vmem %s16_s11, 16  ;;  %p173_p1 = scmp.lt.s32.totalorder %s16_s11, %s16_s11 }
   0x3   :  { %p169_p0 = scmp.ne.s32.totalorder %s16_s11, %s168_s12  ;;  %p174_p2 = scmp.lt.s32.totalorder %s168_s12, %s168_s12 }
   0x5   :  { %p175_p3 = por %p174_p2, %p173_p1 }
   0x7   :  { %p176_p4 = pnand %p175_p3, %p169_p0 }
   0x9   :  { %179 = shalt.err (!%p176_p4)
}
   0xa   :  { %s212_s13 = smov [#allocation2]  }
   0xb   :  { %18 = dma.vmem_to_smem %s16_s11, 16, %s212_s13, [#allocation4]  }
   0xc   :  { %204 = dma.done.wait [#allocation4], 16  }
   0xd   :  { %205 = vsyncadd [#allocation4], 4294967280 }
   0xe   :  { %24 = sfence }
   0xf   :  { %s234_s14 = smov 0  }
  0x10 LB: > { %s141_s0 = sshll.u32 %s210_s14, 3  ;;  %vm37_vm0 = vcmask 253952   ;;  %s30_s14 = sadd.s32 1, %s210_s14   ;;  %s210_s14 = sphi %s234_s14, %s30_s14  }
  0x11   : > { %s32_s15 = sld [smem:[#allocation2 + %s141_s0]]  ;;  %s39_s16 = sadd.s32 1, %s141_s0 }
  0x12   : > { %s46_s17 = sadd.s32 2, %s141_s0  ;;  %s40_s18 = sld [smem:[#allocation2 + %s39_s16]] }
  0x13   : > { %s53_s19 = sadd.s32 3, %s141_s0  ;;  %s47_s20 = sld [smem:[#allocation2 + %s46_s17]] }
  0x14   : > { %s60_s21 = sadd.s32 4, %s141_s0  ;;  %s54_s22 = sld [smem:[#allocation2 + %s53_s19]] }
  0x15   : > { %s67_s23 = sadd.s32 5, %s141_s0  ;;  %s61_s24 = sld [smem:[#allocation2 + %s60_s21]] }
  0x16   : > { %s74_s25 = sadd.s32 6, %s141_s0  ;;  %s68_s29 = sld [smem:[#allocation2 + %s67_s23]] }
  0x17   : > { %s33_s28 = scalar_lea.vmem %s279_s1, %s32_s15  ;;  %s75_s30 = sld [smem:[#allocation2 + %s74_s25]] }
  0x18   : > { %v34_v0 = vld [vmem:[%s33_s28] sm:$0x1]  ;;  %s81_s3 = sadd.s32 7, %s141_s0  ;;  %s41_s6 = scalar_lea.vmem %s279_s1, %s40_s18 }
  0x19   : > { %v35_v1 = vmul.f32 5.656854, %v34_v0  ;;  %s82_s7 = sld [smem:[#allocation2 + %s81_s3]]  ;;  %v42_v2 = vld [vmem:[%s41_s6] sm:$0x1]  ;;  %s48_s10 = scalar_lea.vmem %s279_s1, %s47_s20 }
  0x1a   : > { %s36_s11 = scalar_lea.vmem [#allocation5], %s141_s0  ;;  %v43_v3 = vmul.f32 5.656854, %v42_v2  ;;  %v49_v4 = vld [vmem:[%s48_s10] sm:$0x1]  ;;  %s55_s15 = scalar_lea.vmem %s279_s1, %s54_s22 }
  0x1b   : > { %38 = vst.msk [vmem:[%s36_s11] sm:$0x1] %vm37_vm0, %v35_v1  ;;  %v50_v5 = vmul.f32 5.656854, %v49_v4  ;;  %v56_v6 = vld [vmem:[%s55_s15] sm:$0x1]  ;;  %s62_s18 = scalar_lea.vmem %s279_s1, %s61_s24 }
  0x1c   : > { %143 = vst.msk [vmem:[%s36_s11 + $0x1] sm:$0x1] %vm37_vm0, %v43_v3  ;;  %v57_v7 = vmul.f32 5.656854, %v56_v6  ;;  %v63_v8 = vld [vmem:[%s62_s18] sm:$0x1]  ;;  %s69_s20 = scalar_lea.vmem %s279_s1, %s68_s29 }
  0x1d   : > { %145 = vst.msk [vmem:[%s36_s11 + $0x2] sm:$0x1] %vm37_vm0, %v50_v5  ;;  %v64_v9 = vmul.f32 5.656854, %v63_v8  ;;  %v70_v10 = vld [vmem:[%s69_s20] sm:$0x1]  ;;  %s76_s23 = scalar_lea.vmem %s279_s1, %s75_s30 }
  0x1e   : > { %147 = vst.msk [vmem:[%s36_s11 + $0x3] sm:$0x1] %vm37_vm0, %v57_v7  ;;  %v71_v11 = vmul.f32 5.656854, %v70_v10  ;;  %v77_v12 = vld [vmem:[%s76_s23] sm:$0x1] }
  0x1f   : > { %s83_s26 = scalar_lea.vmem %s279_s1, %s82_s7  ;;  %149 = vst.msk [vmem:[%s36_s11 + $0x4] sm:$0x1] %vm37_vm0, %v64_v9  ;;  %v78_v13 = vmul.f32 5.656854, %v77_v12  ;;  %p27_p5 = scmp.ge.s32.totalorder %s30_s14, 2  }
  0x20   : > { %v84_v14 = vld [vmem:[%s83_s26] sm:$0x1]  ;;  %151 = vst.msk [vmem:[%s36_s11 + $0x5] sm:$0x1] %vm37_vm0, %v71_v11  ;;  %s213_s27 = smov (%p27_p5), [#allocation5]  }
  0x21   : > { %v85_v15 = vmul.f32 5.656854, %v84_v14  ;;  %153 = vst.msk [vmem:[%s36_s11 + $0x6] sm:$0x1] %vm37_vm0, %v78_v13  ;;  %29 = sbr.rel (!%p27_p5) target bundleno = 16 (0x10), region = 55  ;;  %s93_s28 = sshll.u32 (%p27_p5), %s213_s27, 4  ;;  %s94_s28 = int_to_ptr.vmem [resolvable:$true] %s93_s28 }
  0x22   :  { %s180_s29 = scalar_lea.vmem (%p27_p5), %s94_s28, 256  ;;  %p185_p7 = scmp.lt.s32.totalorder (%p27_p5), %s94_s28, %s94_s28 }
  0x23   : > { %155 = vst.msk [vmem:[%s36_s11 + $0x7] sm:$0x1] %vm37_vm0, %v85_v15  ;;  %p181_p6 = scmp.ne.s32.totalorder (%p27_p5), %s94_s28, %s180_s29  ;;  %p186_p8 = scmp.lt.s32.totalorder (%p27_p5), %s180_s29, %s180_s29 }
  0x25   :  { %p187_p9 = por (%p27_p5), %p186_p8, %p185_p7 }
  0x27   :  { %p188_p10 = pnand %p187_p9, %p181_p6 }
  0x29   :  { %191 = shalt.err (!%p188_p10)
}
  0x2a   :  { %s214_s30 = smov 128   ;;  %s215_s3 = smov 8  }
  0x2b   :  { %99 = dma.vmem_to_hbm [thread:$0]  %s94_s28, 256, %s280_s2, [#allocation3], %s214_s30, %s214_s30, %s215_s3  }
  0x2c   :  { %206 = dma.done.wait [#allocation3], 256  }
  0x2d   :  { %207 = vsyncadd [#allocation3], 4294967040 }
  0x2e   :  { %103 = vsyncpa [#allocation3], 1 }
  0x2f   :  { %104 = vsyncpa [#allocation4], 1 }

</bundles_post_ra>
